<compile_context>
chip_gen: v6e
topology: v6e:2x2x1
jax: 0.10.0
libtpu: 0.0.40
codegen_flags: <defaults>
</compile_context>

<pallas_src>
import jax
import jax.numpy as jnp
from jax.experimental import pallas as pl
from jax.experimental.pallas import tpu as pltpu


# ----------------------------- Pallas kernel ------------------------------ #
def decoder_kernel(tok_ref, hid_ref, enc_ref,
                   emb_ref,
                   wa_e_ref, wh_ref, bh_ref, va_ref,
                   wi_ref, bi_ref,
                   wf_ref, bf_ref,
                   pred_ref, hnew_ref,
                   emb_scr):
    f32 = jnp.float32
    B, H = hid_ref.shape                 # B is sublane-padded (multiple of 8)
    SB, D = enc_ref.shape                # SB = S * B, s-major row groups
    S = SB // B
    Ha = wa_e_ref.shape[1]

    def sigmoid(x):
        # exact identity sigmoid(x) = 0.5*(tanh(x/2)+1); tanh runs on the EUP.
        return 0.5 * (jnp.tanh(0.5 * x) + 1.0)

    # ---- Embedding: B row-stores into VMEM scratch (no sublane concat chain)
    for b in range(B):
        emb_scr[pl.ds(b, 1), :] = emb_ref[pl.ds(tok_ref[b], 1), :]
    embedded = emb_scr[...]                                          # [B, E]

    h = hid_ref[...]                                                 # [B, H]
    enc = enc_ref[...]                                               # [S*B, D]

    # ---- Fused h-LHS matmul: attention projection | GRU hidden gates -------
    h_all = jnp.dot(h, wh_ref[...], preferred_element_type=f32) + bh_ref[...]
    h_proj = h_all[:, 0:Ha]                                          # [B, Ha]
    gh = h_all[:, Ha:Ha + 3 * H]                                     # [B, 3H]

    # ---- Additive attention (2 MXU pushes), tile-aligned [S, B, .] groups --
    e_proj = jnp.dot(enc, wa_e_ref[...], preferred_element_type=f32)      # [S*B, Ha]
    energy = jnp.tanh(e_proj.reshape(S, B, Ha) + h_proj[None])            # [S, B, Ha]
    scores = jnp.dot(energy.reshape(SB, Ha), va_ref[...],
                     preferred_element_type=f32).reshape(S, B, 1)         # [S, B, 1]

    # Stable softmax over S: leading-axis reductions on aligned vregs.
    m = jnp.max(scores, axis=0)                                      # [B, 1]
    p = jnp.exp(scores - m[None])                                    # [S, B, 1]
    denom = jnp.sum(p, axis=0)                                       # [B, 1]
    wsum = jnp.sum(p * enc.reshape(S, B, D), axis=0)                 # [B, D]
    weighted = wsum / denom                                          # [B, D] (exact)

    # ---- GRU cell (PyTorch gate order r, z, n) ------------------------------
    x = jnp.concatenate([embedded, weighted], axis=1)                # [B, E+D]
    gi = jnp.dot(x, wi_ref[...], preferred_element_type=f32) + bi_ref[...]  # [B, 3H]

    r = sigmoid(gi[:, 0:H] + gh[:, 0:H])
    z = sigmoid(gi[:, H:2 * H] + gh[:, H:2 * H])
    n = jnp.tanh(gi[:, 2 * H:3 * H] + r * gh[:, 2 * H:3 * H])
    h_new = (1.0 - z) * n + z * h                                    # [B, H]

    # ---- fc_out: single K = E + D + H matmul; feat reuses x -----------------
    feat = jnp.concatenate([x, h_new], axis=1)                       # [B, E+D+H]
    pred_ref[...] = jnp.dot(feat, wf_ref[...], preferred_element_type=f32) + bf_ref[...]
    hnew_ref[...] = h_new


# ------------------------------- wrapper ----------------------------------- #
def gru_attention_decoder(tok, hidden, encoder_outputs_sbd, params):
    """tok: [B] int, hidden: [B,H], encoder_outputs_sbd: [S,B,D] (PyTorch layout)."""
    B, H = hidden.shape
    S, _, D = encoder_outputs_sbd.shape
    V, E = params["emb_W"].shape
    Ha = params["Wa_h"].shape[1]

    # Pad batch to a multiple of 8 so every per-position row group lies on a
    # sublane tile boundary inside the kernel; padded rows are sliced off.
    B_pad = ((B + 7) // 8) * 8
    pad = B_pad - B
    tok_p = jnp.pad(jnp.clip(tok.astype(jnp.int32), 0, V - 1), (0, pad))
    hid_p = jnp.pad(hidden, ((0, pad), (0, 0)))
    enc_p = jnp.pad(encoder_outputs_sbd, ((0, 0), (0, pad), (0, 0)))
    enc_flat = enc_p.reshape(S * B_pad, D)        # free leading-dim flatten

    # Weight prep (fuse once; in an autoregressive loop hoist out of the loop).
    # TODO(synk): bf16 weight storage + VMEM residency across decode steps for
    # production shapes.
    wh_fused = jnp.concatenate(
        [params["Wa_h"], params["Wh_r"], params["Wh_z"], params["Wh_n"]], axis=1)  # [H, Ha+3H]
    bh_fused = jnp.concatenate(
        [params["ba"], params["bh_r"], params["bh_z"], params["bh_n"]], axis=1)    # [1, Ha+3H]
    wi_all = jnp.concatenate([params["Wi_r"], params["Wi_z"], params["Wi_n"]], axis=1)
    bi_all = jnp.concatenate([params["bi_r"], params["bi_z"], params["bi_n"]], axis=1)
    # [Wf_e; Wf_w; Wf_h] so feat = [embedded | weighted | h_new] reuses x.
    wf_all = jnp.concatenate([params["Wf_e"], params["Wf_w"], params["Wf_h"]], axis=0)

    inputs = (
        tok_p, hid_p, enc_flat,
        params["emb_W"],
        params["Wa_e"], wh_fused, bh_fused, params["va"],
        wi_all, bi_all,
        wf_all, params["bf"],
    )

    vmem = pl.BlockSpec(memory_space=pltpu.MemorySpace.VMEM)
    smem = pl.BlockSpec(memory_space=pltpu.MemorySpace.SMEM)

    pred, h_new = pl.pallas_call(
        decoder_kernel,
        out_shape=(jax.ShapeDtypeStruct((B_pad, V), jnp.float32),
                   jax.ShapeDtypeStruct((B_pad, H), jnp.float32)),
        in_specs=[smem] + [vmem] * (len(inputs) - 1),
        out_specs=(vmem, vmem),
        scratch_shapes=[pltpu.VMEM((B_pad, E), jnp.float32)],
    )(*inputs)
    return pred[:B], h_new[:B]


# ------------------------- pure-JAX reference ------------------------------ #
def reference(tok, hidden, encoder_outputs_sbd, p):
    emb = p["emb_W"][tok]                                            # [B, E]
    enc = jnp.transpose(encoder_outputs_sbd, (1, 0, 2))              # [B, S, D]
    B, S, D = enc.shape
    H = hidden.shape[1]

    h_rep = jnp.broadcast_to(hidden[:, None, :], (B, S, H))
    energy = jnp.tanh(h_rep @ p["Wa_h"] + enc @ p["Wa_e"] + p["ba"])
    scores = (energy @ p["va"])[..., 0]                              # [B, S]
    a = jax.nn.softmax(scores, axis=1)
    weighted = jnp.einsum("bs,bsd->bd", a, enc)                      # [B, D]

    x = jnp.concatenate([emb, weighted], axis=1)
    r = jax.nn.sigmoid(x @ p["Wi_r"] + p["bi_r"] + hidden @ p["Wh_r"] + p["bh_r"])
    z = jax.nn.sigmoid(x @ p["Wi_z"] + p["bi_z"] + hidden @ p["Wh_z"] + p["bh_z"])
    n = jnp.tanh(x @ p["Wi_n"] + p["bi_n"] + r * (hidden @ p["Wh_n"] + p["bh_n"]))
    h_new = (1.0 - z) * n + z * hidden

    pred = h_new @ p["Wf_h"] + weighted @ p["Wf_w"] + emb @ p["Wf_e"] + p["bf"]
    return pred, h_new


# ------------------------------ param init --------------------------------- #
def make_params(key, V, E, D, H, Ha):
    ks = list(jax.random.split(key, 24))
    def w(shape, scale=0.1):
        k = ks.pop()
        return (scale * jax.random.normal(k, shape)).astype(jnp.float32)
    return dict(
        emb_W=w((V, E)),
        Wa_h=w((H, Ha)), Wa_e=w((D, Ha)), ba=w((1, Ha)), va=w((Ha, 1)),
        Wi_r=w((E + D, H)), Wi_z=w((E + D, H)), Wi_n=w((E + D, H)),
        Wh_r=w((H, H)), Wh_z=w((H, H)), Wh_n=w((H, H)),
        bi_r=w((1, H)), bi_z=w((1, H)), bi_n=w((1, H)),
        bh_r=w((1, H)), bh_z=w((1, H)), bh_n=w((1, H)),
        Wf_h=w((H, V)), Wf_w=w((D, V)), Wf_e=w((E, V)), bf=w((1, V)),
    )


if __name__ == "__main__":
    # module hyper-params: output_dim=V, emb_dim=E, enc_hid_dim (D=2*enc_hid), dec_hid_dim=H
    B, S = 4, 8
    V, E, ENC_H, H = 128, 32, 32, 32
    D = 2 * ENC_H
    Ha = H  # attention's internal projection dim (standard Bahdanau attention)

    key = jax.random.PRNGKey(0)
    kp, kt, kh, ke = jax.random.split(key, 4)

    params = make_params(kp, V, E, D, H, Ha)
    tok = jax.random.randint(kt, (B,), 0, V, dtype=jnp.int32)               # `input` [B]
    hidden = (0.1 * jax.random.normal(kh, (B, H))).astype(jnp.float32)      # `hidden` [B, H]
    enc_sbd = (0.1 * jax.random.normal(ke, (S, B, D))).astype(jnp.float32)  # [S, B, 2*enc_hid]

    pred, h_new = jax.block_until_ready(gru_attention_decoder(tok, hidden, enc_sbd, params))
    pred_ref, h_ref = reference(tok, hidden, enc_sbd, params)

    assert pred.shape == (B, V) and h_new.shape == (B, H)
    # Tolerance covers MXU vs XLA accumulation-order differences only
    # (softmax normalization is now exact division, no approx reciprocal).
    assert jnp.allclose(pred, pred_ref, rtol=1e-3, atol=1e-3)
    assert jnp.allclose(h_new, h_ref, rtol=1e-3, atol=1e-3)
    print("KERNEL_OK")
</pallas_src>

<mosaic_0001>
module attributes {stable_mosaic.version = 11 : i64} {
  func.func @decoder_kernel(%arg0: memref<8xi32, #tpu.memory_space<smem>>, %arg1: memref<8x32xf32, #tpu.memory_space<vmem>>, %arg2: memref<64x64xf32, #tpu.memory_space<vmem>>, %arg3: memref<128x32xf32, #tpu.memory_space<vmem>>, %arg4: memref<64x32xf32, #tpu.memory_space<vmem>>, %arg5: memref<32x128xf32, #tpu.memory_space<vmem>>, %arg6: memref<1x128xf32, #tpu.memory_space<vmem>>, %arg7: memref<32x1xf32, #tpu.memory_space<vmem>>, %arg8: memref<96x96xf32, #tpu.memory_space<vmem>>, %arg9: memref<1x96xf32, #tpu.memory_space<vmem>>, %arg10: memref<128x128xf32, #tpu.memory_space<vmem>>, %arg11: memref<1x128xf32, #tpu.memory_space<vmem>>, %arg12: memref<8x128xf32, #tpu.memory_space<vmem>>, %arg13: memref<8x32xf32, #tpu.memory_space<vmem>>, %arg14: memref<8x32xf32, #tpu.memory_space<vmem>>) attributes {dimension_semantics = [], scalar_prefetch = 0 : i64, scratch_operands = 1 : i64, tpu.core_type = #tpu.core_type<tc>} {
    %c0 = arith.constant 0 : index
    %0 = memref.load %arg0[%c0] : memref<8xi32, #tpu.memory_space<smem>>
    %1 = arith.index_cast %0 : i32 to index
    %c0_0 = arith.constant 0 : index
    %2 = vector.load %arg3[%1, %c0_0] : memref<128x32xf32, #tpu.memory_space<vmem>>, vector<1x32xf32>
    %c0_1 = arith.constant 0 : index
    %c0_2 = arith.constant 0 : index
    %3 = vector.load %arg14[%c0_1, %c0_2] : memref<8x32xf32, #tpu.memory_space<vmem>>, vector<1x32xf32>
    tpu.vector_store %arg14[%c0_1, %c0_2], %2 {strides = array<i32>} : memref<8x32xf32, #tpu.memory_space<vmem>>, vector<1x32xf32>,
    %c1 = arith.constant 1 : index
    %4 = memref.load %arg0[%c1] : memref<8xi32, #tpu.memory_space<smem>>
    %5 = arith.index_cast %4 : i32 to index
    %c0_3 = arith.constant 0 : index
    %6 = vector.load %arg3[%5, %c0_3] : memref<128x32xf32, #tpu.memory_space<vmem>>, vector<1x32xf32>
    %c1_4 = arith.constant 1 : index
    %c0_5 = arith.constant 0 : index
    %7 = vector.load %arg14[%c1_4, %c0_5] : memref<8x32xf32, #tpu.memory_space<vmem>>, vector<1x32xf32>
    tpu.vector_store %arg14[%c1_4, %c0_5], %6 {strides = array<i32>} : memref<8x32xf32, #tpu.memory_space<vmem>>, vector<1x32xf32>,
    %c2 = arith.constant 2 : index
    %8 = memref.load %arg0[%c2] : memref<8xi32, #tpu.memory_space<smem>>
    %9 = arith.index_cast %8 : i32 to index
    %c0_6 = arith.constant 0 : index
    %10 = vector.load %arg3[%9, %c0_6] : memref<128x32xf32, #tpu.memory_space<vmem>>, vector<1x32xf32>
    %c2_7 = arith.constant 2 : index
    %c0_8 = arith.constant 0 : index
    %11 = vector.load %arg14[%c2_7, %c0_8] : memref<8x32xf32, #tpu.memory_space<vmem>>, vector<1x32xf32>
    tpu.vector_store %arg14[%c2_7, %c0_8], %10 {strides = array<i32>} : memref<8x32xf32, #tpu.memory_space<vmem>>, vector<1x32xf32>,
    %c3 = arith.constant 3 : index
    %12 = memref.load %arg0[%c3] : memref<8xi32, #tpu.memory_space<smem>>
    %13 = arith.index_cast %12 : i32 to index
    %c0_9 = arith.constant 0 : index
    %14 = vector.load %arg3[%13, %c0_9] : memref<128x32xf32, #tpu.memory_space<vmem>>, vector<1x32xf32>
    %c3_10 = arith.constant 3 : index
    %c0_11 = arith.constant 0 : index
    %15 = vector.load %arg14[%c3_10, %c0_11] : memref<8x32xf32, #tpu.memory_space<vmem>>, vector<1x32xf32>
    tpu.vector_store %arg14[%c3_10, %c0_11], %14 {strides = array<i32>} : memref<8x32xf32, #tpu.memory_space<vmem>>, vector<1x32xf32>,
    %c4 = arith.constant 4 : index
    %16 = memref.load %arg0[%c4] : memref<8xi32, #tpu.memory_space<smem>>
    %17 = arith.index_cast %16 : i32 to index
    %c0_12 = arith.constant 0 : index
    %18 = vector.load %arg3[%17, %c0_12] : memref<128x32xf32, #tpu.memory_space<vmem>>, vector<1x32xf32>
    %c4_13 = arith.constant 4 : index
    %c0_14 = arith.constant 0 : index
    %19 = vector.load %arg14[%c4_13, %c0_14] : memref<8x32xf32, #tpu.memory_space<vmem>>, vector<1x32xf32>
    tpu.vector_store %arg14[%c4_13, %c0_14], %18 {strides = array<i32>} : memref<8x32xf32, #tpu.memory_space<vmem>>, vector<1x32xf32>,
    %c5 = arith.constant 5 : index
    %20 = memref.load %arg0[%c5] : memref<8xi32, #tpu.memory_space<smem>>
    %21 = arith.index_cast %20 : i32 to index
    %c0_15 = arith.constant 0 : index
    %22 = vector.load %arg3[%21, %c0_15] : memref<128x32xf32, #tpu.memory_space<vmem>>, vector<1x32xf32>
    %c5_16 = arith.constant 5 : index
    %c0_17 = arith.constant 0 : index
    %23 = vector.load %arg14[%c5_16, %c0_17] : memref<8x32xf32, #tpu.memory_space<vmem>>, vector<1x32xf32>
    tpu.vector_store %arg14[%c5_16, %c0_17], %22 {strides = array<i32>} : memref<8x32xf32, #tpu.memory_space<vmem>>, vector<1x32xf32>,
    %c6 = arith.constant 6 : index
    %24 = memref.load %arg0[%c6] : memref<8xi32, #tpu.memory_space<smem>>
    %25 = arith.index_cast %24 : i32 to index
    %c0_18 = arith.constant 0 : index
    %26 = vector.load %arg3[%25, %c0_18] : memref<128x32xf32, #tpu.memory_space<vmem>>, vector<1x32xf32>
    %c6_19 = arith.constant 6 : index
    %c0_20 = arith.constant 0 : index
    %27 = vector.load %arg14[%c6_19, %c0_20] : memref<8x32xf32, #tpu.memory_space<vmem>>, vector<1x32xf32>
    tpu.vector_store %arg14[%c6_19, %c0_20], %26 {strides = array<i32>} : memref<8x32xf32, #tpu.memory_space<vmem>>, vector<1x32xf32>,
    %c7 = arith.constant 7 : index
    %28 = memref.load %arg0[%c7] : memref<8xi32, #tpu.memory_space<smem>>
    %29 = arith.index_cast %28 : i32 to index
    %c0_21 = arith.constant 0 : index
    %30 = vector.load %arg3[%29, %c0_21] : memref<128x32xf32, #tpu.memory_space<vmem>>, vector<1x32xf32>
    %c7_22 = arith.constant 7 : index
    %c0_23 = arith.constant 0 : index
    %31 = vector.load %arg14[%c7_22, %c0_23] : memref<8x32xf32, #tpu.memory_space<vmem>>, vector<1x32xf32>
    tpu.vector_store %arg14[%c7_22, %c0_23], %30 {strides = array<i32>} : memref<8x32xf32, #tpu.memory_space<vmem>>, vector<1x32xf32>,
    %c0_24 = arith.constant 0 : index
    %c0_25 = arith.constant 0 : index
    %32 = vector.load %arg14[%c0_24, %c0_25] : memref<8x32xf32, #tpu.memory_space<vmem>>, vector<8x32xf32>
    %c0_26 = arith.constant 0 : index
    %c0_27 = arith.constant 0 : index
    %33 = vector.load %arg1[%c0_26, %c0_27] : memref<8x32xf32, #tpu.memory_space<vmem>>, vector<8x32xf32>
    %c0_28 = arith.constant 0 : index
    %c0_29 = arith.constant 0 : index
    %34 = vector.load %arg2[%c0_28, %c0_29] : memref<64x64xf32, #tpu.memory_space<vmem>>, vector<64x64xf32>
    %c0_30 = arith.constant 0 : index
    %c0_31 = arith.constant 0 : index
    %35 = vector.load %arg5[%c0_30, %c0_31] : memref<32x128xf32, #tpu.memory_space<vmem>>, vector<32x128xf32>
    %cst = arith.constant dense<0.000000e+00> : vector<8x128xf32>
    %36 = tpu.matmul %33, %35, %cst {dimension_numbers = #tpu.dot_dimension_numbers<[1], [0], [0], [1], [0, 0, 1, 1], [], []>} : vector<8x32xf32>, vector<32x128xf32>, vector<8x128xf32> -> vector<8x128xf32>
    %c0_32 = arith.constant 0 : index
    %c0_33 = arith.constant 0 : index
    %37 = vector.load %arg6[%c0_32, %c0_33] : memref<1x128xf32, #tpu.memory_space<vmem>>, vector<1x128xf32>
    %38 = vector.broadcast %37 : vector<1x128xf32> to vector<8x128xf32>
    %39 = arith.addf %36, %38 : vector<8x128xf32>
    %40 = vector.extract_strided_slice %39 {offsets = [0, 0], sizes = [8, 32], strides = [1, 1]} : vector<8x128xf32> to vector<8x32xf32>
    %41 = vector.extract_strided_slice %39 {offsets = [0, 32], sizes = [8, 96], strides = [1, 1]} : vector<8x128xf32> to vector<8x96xf32>
    %c0_34 = arith.constant 0 : index
    %c0_35 = arith.constant 0 : index
    %42 = vector.load %arg4[%c0_34, %c0_35] : memref<64x32xf32, #tpu.memory_space<vmem>>, vector<64x32xf32>
    %cst_36 = arith.constant dense<0.000000e+00> : vector<64x32xf32>
    %43 = tpu.matmul %34, %42, %cst_36 {dimension_numbers = #tpu.dot_dimension_numbers<[1], [0], [0], [1], [0, 0, 1, 1], [], []>} : vector<64x64xf32>, vector<64x32xf32>, vector<64x32xf32> -> vector<64x32xf32>
    %44 = vector.shape_cast %43 : vector<64x32xf32> to vector<8x8x32xf32>
    %45 = vector.shape_cast %40 : vector<8x32xf32> to vector<1x8x32xf32>
    %46 = vector.broadcast %45 : vector<1x8x32xf32> to vector<8x8x32xf32>
    %47 = arith.addf %44, %46 : vector<8x8x32xf32>
    %48 = math.tanh %47 : vector<8x8x32xf32>
    %49 = vector.shape_cast %48 : vector<8x8x32xf32> to vector<64x32xf32>
    %c0_37 = arith.constant 0 : index
    %c0_38 = arith.constant 0 : index
    %50 = vector.load %arg7[%c0_37, %c0_38] : memref<32x1xf32, #tpu.memory_space<vmem>>, vector<32x1xf32>
    %cst_39 = arith.constant dense<0.000000e+00> : vector<64x1xf32>
    %51 = tpu.matmul %49, %50, %cst_39 {dimension_numbers = #tpu.dot_dimension_numbers<[1], [0], [0], [1], [0, 0, 1, 1], [], []>} : vector<64x32xf32>, vector<32x1xf32>, vector<64x1xf32> -> vector<64x1xf32>
    %52 = vector.shape_cast %51 : vector<64x1xf32> to vector<8x8x1xf32>
    %cst_40 = arith.constant dense<0xFF800000> : vector<8x1xf32>
    %53 = vector.multi_reduction <maximumf>, %52, %cst_40 [0] : vector<8x8x1xf32> to vector<8x1xf32>
    %54 = vector.shape_cast %53 : vector<8x1xf32> to vector<1x8x1xf32>
    %55 = vector.broadcast %54 : vector<1x8x1xf32> to vector<8x8x1xf32>
    %56 = arith.subf %52, %55 : vector<8x8x1xf32>
    %57 = math.exp %56 : vector<8x8x1xf32>
    %cst_41 = arith.constant dense<0.000000e+00> : vector<8x1xf32>
    %58 = vector.multi_reduction <add>, %57, %cst_41 [0] : vector<8x8x1xf32> to vector<8x1xf32>
    %59 = vector.shape_cast %34 : vector<64x64xf32> to vector<8x8x64xf32>
    %60 = vector.broadcast %57 : vector<8x8x1xf32> to vector<8x8x64xf32>
    %61 = arith.mulf %60, %59 : vector<8x8x64xf32>
    %cst_42 = arith.constant dense<0.000000e+00> : vector<8x64xf32>
    %62 = vector.multi_reduction <add>, %61, %cst_42 [0] : vector<8x8x64xf32> to vector<8x64xf32>
    %63 = vector.broadcast %58 : vector<8x1xf32> to vector<8x64xf32>
    %64 = arith.divf %62, %63 : vector<8x64xf32>
    %65 = tpu.concatenate %32, %64 in 1 : vector<8x32xf32>, vector<8x64xf32> -> vector<8x96xf32>
    %c0_43 = arith.constant 0 : index
    %c0_44 = arith.constant 0 : index
    %66 = vector.load %arg8[%c0_43, %c0_44] : memref<96x96xf32, #tpu.memory_space<vmem>>, vector<96x96xf32>
    %cst_45 = arith.constant dense<0.000000e+00> : vector<8x96xf32>
    %67 = tpu.matmul %65, %66, %cst_45 {dimension_numbers = #tpu.dot_dimension_numbers<[1], [0], [0], [1], [0, 0, 1, 1], [], []>} : vector<8x96xf32>, vector<96x96xf32>, vector<8x96xf32> -> vector<8x96xf32>
    %c0_46 = arith.constant 0 : index
    %c0_47 = arith.constant 0 : index
    %68 = vector.load %arg9[%c0_46, %c0_47] : memref<1x96xf32, #tpu.memory_space<vmem>>, vector<1x96xf32>
    %69 = vector.broadcast %68 : vector<1x96xf32> to vector<8x96xf32>
    %70 = arith.addf %67, %69 : vector<8x96xf32>
    %71 = vector.extract_strided_slice %70 {offsets = [0, 0], sizes = [8, 32], strides = [1, 1]} : vector<8x96xf32> to vector<8x32xf32>
    %72 = vector.extract_strided_slice %41 {offsets = [0, 0], sizes = [8, 32], strides = [1, 1]} : vector<8x96xf32> to vector<8x32xf32>
    %73 = arith.addf %71, %72 : vector<8x32xf32>
    %cst_48 = arith.constant 5.000000e-01 : f32
    %74 = vector.broadcast %cst_48 : f32 to vector<8x32xf32>
    %75 = arith.mulf %74, %73 : vector<8x32xf32>
    %76 = math.tanh %75 : vector<8x32xf32>
    %cst_49 = arith.constant 1.000000e+00 : f32
    %77 = vector.broadcast %cst_49 : f32 to vector<8x32xf32>
    %78 = arith.addf %76, %77 : vector<8x32xf32>
    %cst_50 = arith.constant 5.000000e-01 : f32
    %79 = vector.broadcast %cst_50 : f32 to vector<8x32xf32>
    %80 = arith.mulf %79, %78 : vector<8x32xf32>
    %81 = vector.extract_strided_slice %70 {offsets = [0, 32], sizes = [8, 32], strides = [1, 1]} : vector<8x96xf32> to vector<8x32xf32>
    %82 = vector.extract_strided_slice %41 {offsets = [0, 32], sizes = [8, 32], strides = [1, 1]} : vector<8x96xf32> to vector<8x32xf32>
    %83 = arith.addf %81, %82 : vector<8x32xf32>
    %cst_51 = arith.constant 5.000000e-01 : f32
    %84 = vector.broadcast %cst_51 : f32 to vector<8x32xf32>
    %85 = arith.mulf %84, %83 : vector<8x32xf32>
    %86 = math.tanh %85 : vector<8x32xf32>
    %cst_52 = arith.constant 1.000000e+00 : f32
    %87 = vector.broadcast %cst_52 : f32 to vector<8x32xf32>
    %88 = arith.addf %86, %87 : vector<8x32xf32>
    %cst_53 = arith.constant 5.000000e-01 : f32
    %89 = vector.broadcast %cst_53 : f32 to vector<8x32xf32>
    %90 = arith.mulf %89, %88 : vector<8x32xf32>
    %91 = vector.extract_strided_slice %70 {offsets = [0, 64], sizes = [8, 32], strides = [1, 1]} : vector<8x96xf32> to vector<8x32xf32>
    %92 = vector.extract_strided_slice %41 {offsets = [0, 64], sizes = [8, 32], strides = [1, 1]} : vector<8x96xf32> to vector<8x32xf32>
    %93 = arith.mulf %80, %92 : vector<8x32xf32>
    %94 = arith.addf %91, %93 : vector<8x32xf32>
    %95 = math.tanh %94 : vector<8x32xf32>
    %cst_54 = arith.constant 1.000000e+00 : f32
    %96 = vector.broadcast %cst_54 : f32 to vector<8x32xf32>
    %97 = arith.subf %96, %90 : vector<8x32xf32>
    %98 = arith.mulf %97, %95 : vector<8x32xf32>
    %99 = arith.mulf %90, %33 : vector<8x32xf32>
    %100 = arith.addf %98, %99 : vector<8x32xf32>
    %101 = tpu.concatenate %65, %100 in 1 : vector<8x96xf32>, vector<8x32xf32> -> vector<8x128xf32>
    %c0_55 = arith.constant 0 : index
    %c0_56 = arith.constant 0 : index
    %102 = vector.load %arg10[%c0_55, %c0_56] : memref<128x128xf32, #tpu.memory_space<vmem>>, vector<128x128xf32>
    %cst_57 = arith.constant dense<0.000000e+00> : vector<8x128xf32>
    %103 = tpu.matmul %101, %102, %cst_57 {dimension_numbers = #tpu.dot_dimension_numbers<[1], [0], [0], [1], [0, 0, 1, 1], [], []>} : vector<8x128xf32>, vector<128x128xf32>, vector<8x128xf32> -> vector<8x128xf32>
    %c0_58 = arith.constant 0 : index
    %c0_59 = arith.constant 0 : index
    %104 = vector.load %arg11[%c0_58, %c0_59] : memref<1x128xf32, #tpu.memory_space<vmem>>, vector<1x128xf32>
    %105 = vector.broadcast %104 : vector<1x128xf32> to vector<8x128xf32>
    %106 = arith.addf %103, %105 : vector<8x128xf32>
    %c0_60 = arith.constant 0 : index
    %c0_61 = arith.constant 0 : index
    %107 = vector.load %arg12[%c0_60, %c0_61] : memref<8x128xf32, #tpu.memory_space<vmem>>, vector<8x128xf32>
    tpu.vector_store %arg12[%c0_60, %c0_61], %106 {strides = array<i32>} : memref<8x128xf32, #tpu.memory_space<vmem>>, vector<8x128xf32>,
    %c0_62 = arith.constant 0 : index
    %c0_63 = arith.constant 0 : index
    %108 = vector.load %arg13[%c0_62, %c0_63] : memref<8x32xf32, #tpu.memory_space<vmem>>, vector<8x32xf32>
    tpu.vector_store %arg13[%c0_62, %c0_63], %100 {strides = array<i32>} : memref<8x32xf32, #tpu.memory_space<vmem>>, vector<8x32xf32>,
    return
  }
}

</mosaic_0001>

<bundles_post_ra>
// kernel: tpu_custom_call.1
= control target key start
LH: loop header
LB: loop body
LE: loop exit
PB: predicated region body
PF: predicated region fallthrough
CT: control target
= control target key end

     0   :  { %19 = vsyncpa [#allocation6], 0  ;;  %s1698_s0 = inlined_call_operand.vmem [shape: s32[8], index: 0, kind: input, shape index: {}]   ;;  %s1699_s1 = inlined_call_operand.hbm [shape: f32[8,32], index: 1, kind: input, shape index: {}]   ;;  %s1700_s2 = inlined_call_operand.vmem [shape: f32[64,64], index: 2, kind: input, shape index: {}]   ;;  %s1701_s3 = inlined_call_operand.vmem [shape: f32[128,32], index: 3, kind: input, shape index: {}]   ;;  %s1702_s4 = inlined_call_operand.vmem [shape: f32[64,32], index: 4, kind: input, shape index: {}]   ;;  %s1703_s5 = inlined_call_operand.hbm [shape: f32[32,128], index: 5, kind: input, shape index: {}]   ;;  %s1704_s6 = inlined_call_operand.vmem [shape: f32[1,128], index: 6, kind: input, shape index: {}]   ;;  %s1705_s7 = inlined_call_operand.vmem [shape: f32[32,1], index: 7, kind: input, shape index: {}]   ;;  %s1706_s8 = inlined_call_operand.vmem [shape: f32[96,96], index: 8, kind: input, shape index: {}]   ;;  %s1707_s9 = inlined_call_operand.vmem [shape: f32[1,96], index: 9, kind: input, shape index: {}]   ;;  %s1708_s10 = inlined_call_operand.vmem [shape: f32[128,128], index: 10, kind: input, shape index: {}]   ;;  %s1709_s11 = inlined_call_operand.vmem [shape: f32[1,128], index: 11, kind: input, shape index: {}]   ;;  %s1710_s12 = inlined_call_operand.hbm [shape: f32[8,128], index: 12, kind: output, shape index: {0}]   ;;  %s1711_s13 = inlined_call_operand.hbm [shape: f32[8,32], index: 13, kind: output, shape index: {1}]  }
   0x1   :  { %20 = vsyncpa [#allocation4], 0 }
   0x2   :  { %21 = vsyncpa [#allocation9], 0 }
   0x3   :  { %22 = vsyncpa [#allocation5], 0 }
   0x4   :  { %23 = vsyncpa [#allocation12], 0  ;;  %s30_s27 = sshll.u32 %s1698_s0, 4  ;;  %s31_s27 = int_to_ptr.vmem [resolvable:$true] %s30_s27 }
   0x5   :  { %s1159_s28 = scalar_lea.vmem %s31_s27, 16  ;;  %p1164_p1 = scmp.lt.s32.totalorder %s31_s27, %s31_s27 }
   0x6   :  { %p1160_p0 = scmp.ne.s32.totalorder %s31_s27, %s1159_s28  ;;  %p1165_p2 = scmp.lt.s32.totalorder %s1159_s28, %s1159_s28 }
   0x8   :  { %p1166_p3 = por %p1165_p2, %p1164_p1 }
   0xa   :  { %p1167_p4 = pnand %p1166_p3, %p1160_p0 }
   0xc   :  { %1170 = shalt.err (!%p1167_p4)
}
   0xd   :  { %s1261_s29 = smov [#allocation3]   ;;  %s1262_s30 = smov [#allocation7]  }
   0xe   :  { %33 = dma.vmem_to_smem %s31_s27, 16, %s1261_s29, [#allocation6]  }
   0xf   :  { %s40_s14 = sshll.u32 %s1262_s30, 4  ;;  %s1263_s15 = smov [#allocation8]   ;;  %s41_s14 = int_to_ptr.vmem [resolvable:$true] %s40_s14 }
  0x10   :  { %s55_s16 = sshll.u32 %s1263_s15, 4  ;;  %s1179_s17 = scalar_lea.vmem %s41_s14, 128  ;;  %s56_s16 = int_to_ptr.vmem [resolvable:$true] %s55_s16 }
  0x11   :  { %p1180_p5 = scmp.ne.s32.totalorder %s41_s14, %s1179_s17  ;;  %p1184_p6 = scmp.lt.s32.totalorder %s41_s14, %s41_s14 }
  0x12   :  { %p1185_p7 = scmp.lt.s32.totalorder %s1179_s17, %s1179_s17 }
  0x14   :  { %p1186_p8 = por %p1185_p7, %p1184_p6 }
  0x16   :  { %p1187_p9 = pnand %p1186_p8, %p1180_p5 }
  0x18   :  { %1190 = shalt.err (!%p1187_p9)
}
  0x19   :  { %43 = dma.hbm_to_vmem [thread:$0]  %s1699_s1, 128, %s41_s14, [#allocation4]  }
  0x1a   :  { %s1199_s19 = scalar_lea.vmem %s56_s16, 512  ;;  %p1204_p11 = scmp.lt.s32.totalorder %s56_s16, %s56_s16 }
  0x1b   :  { %p1200_p10 = scmp.ne.s32.totalorder %s56_s16, %s1199_s19  ;;  %p1205_p12 = scmp.lt.s32.totalorder %s1199_s19, %s1199_s19 }
  0x1d   :  { %p1206_p13 = por %p1205_p12, %p1204_p11 }
  0x1f   :  { %p1207_p0 = pnand %p1206_p13, %p1200_p10 }
  0x21   :  { %1210 = shalt.err (!%p1207_p0)
}
  0x22   :  { %s1264_s20 = smov 128   ;;  %s1265_s21 = smov 8  }
  0x23   :  { %61 = dma.hbm_to_vmem [thread:$0]  %s1703_s5, 512, %s56_s16, [#allocation9], %s1264_s20, %s1264_s20, %s1265_s21  }
  0x24   :  { %1251 = dma.done.wait [#allocation6], 16  }
  0x25   :  { %1252 = vsyncadd [#allocation6], 4294967280 }
  0x26   :  { %1253 = dma.done.wait [#allocation4], 128  }
  0x27   :  { %1254 = vsyncadd [#allocation4], 4294967168 }
  0x28   :  { %1255 = dma.done.wait [#allocation9], 512  }
  0x29   :  { %1256 = vsyncadd [#allocation9], 4294966784 }
  0x2a   :  { %83 = sfence }
  0x2b   :  { %v219_v0 = vld [vmem:[%s1702_s4 + $0x38] sm:$0xff]  ;;  %v218_v1 = vld [vmem:[%s1702_s4 + $0x30] sm:$0xff]  ;;  %v1266_v2 = vmov 0.0   ;;  %v130_v3 = vld [vmem:[#allocation8 + $0x18] sm:$0xff]  ;;  %vm138_vm0 = vcmask 261120   ;;  %vm220_vm1 = vcmask 523264  }
  0x2c   :  { %996 = vmatprep.subr.mxu1 %v219_v0  ;;  %985 = vmatprep.subr.mxu0 %v1266_v2  ;;  %v217_v4 = vld [vmem:[%s1702_s4 + $0x28] sm:$0xff]  ;;  %v129_v5 = vld [vmem:[#allocation8 + $0x10] sm:$0xff]  ;;  %v128_v6 = vld [vmem:[#allocation8 + $0x8] sm:$0xff]  ;;  %vm1267_vm2 = vmmov 0   ;;  %v1268_v54 = vmov 0   ;;  %vm499_vm3 = vcmask 7168  }
  0x2d   :  { %997 = vmatpush3.msra.mxu1 %v219_v0  ;;  %986 = vmatpush3.msra.mxu0 %v130_v3  ;;  %v216_v7 = vld [vmem:[%s1702_s4 + $0x20] sm:$0xff]  ;;  %v127_v8 = vld [vmem:[#allocation8] sm:$0xff]  ;;  %v215_v9 = vld [vmem:[%s1702_s4 + $0x18] sm:$0xff]  ;;  %s84_s23 = sld [smem:[#allocation3]]  ;;  %vm87_vm4 = vcmask 253952   ;;  %vm648_vm5 = vcmask 785408  }
  0x2e   :  { %998 = vmatprep.subr.mxu1 %v218_v1  ;;  %987 = vmatprep.subr.mxu0 %v1266_v2  ;;  %v1372_v10 = vld [vmem:[#allocation7] sm:$0xff]  ;;  %v214_v11 = vld [vmem:[%s1702_s4 + $0x10] sm:$0xff]  ;;  %v1380_v12 = vld [vmem:[%s1700_s2] sm:$0xff]  ;;  %s895_s1 = sld [smem:[#allocation3 + $0x2]] }
  0x2f   :  { %999 = vmatpush3.msra.mxu1 %v218_v1  ;;  %988 = vmatpush3.msra.mxu0 %v129_v5  ;;  %v213_v13 = vld [vmem:[%s1702_s4 + $0x8] sm:$0xff]  ;;  %v212_v14 = vld [vmem:[%s1702_s4] sm:$0xff]  ;;  %v1402_v16 = vld [vmem:[%s1700_s2 + $0x10] sm:$0xff]  ;;  %s896_s24 = sld [smem:[#allocation3 + $0x3]] }
  0x30   :  { %1000 = vmatprep.subr.mxu1 %v217_v4  ;;  %989 = vmatprep.subr.mxu0 %v1266_v2  ;;  %v1397_v15 = vld [vmem:[%s1700_s2 + $0x8] sm:$0xff]  ;;  %v1412_v17 = vld [vmem:[%s1700_s2 + $0x18] sm:$0xff]  ;;  %v1417_v18 = vld [vmem:[%s1700_s2 + $0x20] sm:$0xff]  ;;  %s897_s4 = sld [smem:[#allocation3 + $0x4]] }
  0x31   :  { %1001 = vmatpush3.msra.mxu1 %v217_v4  ;;  %990 = vmatpush3.msra.mxu0 %v128_v6  ;;  %v1426_v19 = vld [vmem:[%s1700_s2 + $0x28] sm:$0xff]  ;;  %v1431_v20 = vld [vmem:[%s1700_s2 + $0x30] sm:$0xff]  ;;  %v1440_v21 = vld [vmem:[%s1700_s2 + $0x38] sm:$0xff]  ;;  %s1549_s25 = sld [smem:[#allocation3 + $0x5]] }
  0x32   :  { %1002 = vmatprep.subr.mxu1 %v216_v7  ;;  %991 = vmatprep.subr.mxu0 %v1266_v2  ;;  %v369_v22 = vld [vmem:[%s1705_s7 + $0x18] sm:$0xff]  ;;  %v368_v23 = vld [vmem:[%s1705_s7 + $0x10] sm:$0xff]  ;;  %v367_v24 = vld [vmem:[%s1705_s7 + $0x8] sm:$0xff]  ;;  %s1555_s28 = sld [smem:[#allocation3 + $0x6]] }
  0x33   :  { %1003 = vmatpush3.msra.mxu1 %v216_v7  ;;  %992 = vmatpush3.msra.mxu0 %v127_v8  ;;  %v366_v25 = vld [vmem:[%s1705_s7] sm:$0xff]  ;;  %s894_s7 = sld [smem:[#allocation3 + $0x1]]  ;;  %s85_s27 = scalar_lea.vmem %s1701_s3, %s84_s23 }
  0x34   :  { %1004 = vmatprep.subr.mxu1 %v215_v9  ;;  %993 = vmatprep.mubr.msk.f32.mxu0 %vm1267_vm2, %v1266_v2  ;;  %v901_v27 = vld [vmem:[%s1704_s6] ss:$0 sm:$0xff]  ;;  %s1269_s6 = smov 96   ;;  %s1560_s15 = sld [smem:[#allocation3 + $0x7]] }
  0x35   :  { %1005 = vmatpush3.msra.mxu1 %v215_v9  ;;  %994 = vmatmul.mubr.msk.f32.vlgmr.msra.gmra.mxu0 %vm138_vm0, %v1372_v10  ;;  %s94_s0 = scalar_lea.vmem %s1701_s3, %s895_s1  ;;  %s98_s19 = scalar_lea.vmem %s1701_s3, %s896_s24 }
  0x36   :  { %1006 = vmatprep.subr.mxu1 %v214_v11  ;;  %1012 = vmatprep.mubr.msk.f32.mxu1 %vm220_vm1, %v1380_v12  ;;  %s102_s22 = scalar_lea.vmem %s1701_s3, %s897_s4 }
  0x37   :  { %1007 = vmatpush3.msra.mxu1 %v214_v11  ;;  %1024 = vmatprep.subr.mxu0 %v369_v22  ;;  %s106_s1 = scalar_lea.vmem %s1701_s3, %s1549_s25 }
  0x38   :  { %1008 = vmatprep.subr.mxu1 %v213_v13  ;;  %1025 = vmatpush3.msra.mxu0 %v369_v22  ;;  %s110_s5 = scalar_lea.vmem %s1701_s3, %s1555_s28 }
  0x39   :  { %1009 = vmatpush3.msra.mxu1 %v213_v13  ;;  %1026 = vmatprep.subr.mxu0 %v368_v23  ;;  %s90_s14 = scalar_lea.vmem %s1701_s3, %s894_s7 }
  0x3a   :  { %1010 = vmatprep.subr.mxu1 %v212_v14  ;;  %1027 = vmatpush3.msra.mxu0 %v368_v23  ;;  %s114_s30 = scalar_lea.vmem %s1701_s3, %s1560_s15  ;;  %s1270_s3 = smov 32  }
  0x3b   :  { %1011 = vmatpush3.msra.mxu1 %v212_v14  ;;  %1028 = vmatprep.subr.mxu0 %v367_v24 }
  0x3c   :  { %1013 = vmatmul.mubr.msk.f32.vlgmr.msra.gmra.mxu1 %vm220_vm1, %v1397_v15  ;;  %1071 = vmatprep.subr.mxu1 %v1266_v2 }
  0x3d   :  { %1015 = vmatprep.mubr.msk.f32.mxu1 %vm220_vm1, %v1402_v16  ;;  %1029 = vmatpush3.msra.mxu0 %v367_v24 }
  0x3e   :  { %1030 = vmatprep.subr.mxu0 %v366_v25  ;;  %1120 = vset.pattern.permute.xlu1 %v1268_v54 }
  0x3f   :  { %1031 = vmatpush3.msra.mxu0 %v366_v25  ;;  %1119 = vset.pattern.permute.xlu0 %v1268_v54 }
  0x40   :  { %1016 = vmatmul.mubr.msk.f32.gmra.mxu1 %vm220_vm1, %v1412_v17  ;;  %1044 = vmatprep.subr.mxu0 %v1266_v2 }
  0x41   :  { %1018 = vmatprep.mubr.msk.f32.mxu1 %vm220_vm1, %v1417_v18 }
  0x44   :  { %1019 = vmatmul.mubr.msk.f32.gmra.mxu1 %vm220_vm1, %v1426_v19 }
  0x45   :  { %1021 = vmatprep.mubr.msk.f32.mxu1 %vm220_vm1, %v1431_v20 }
  0x48   :  { %1022 = vmatmul.mubr.msk.f32.gmra.mxu1 %vm220_vm1, %v1440_v21 }
  0x49   :  { %1103 = vmatprep.mubr.msk.f32.mxu1 %vm1267_vm2, %v1266_v2 }
  0xf5   :  { %v208_v26 = vpop.f32.mrf.mxu0 }
  0xf6   :  { %v1462_v29 = vadd.f32 %v901_v27, %v208_v26 }
  0xf7   :  { %v995_v28 = vpop.f32.mrf.mxu0 }
  0xfc   :  { %v1014_v30 = vpop.f32.mrf.mxu1 }
  0xfd   :  { %v351_v31 = vadd.f32 %v1014_v30, %v1462_v29 }
  0xfe   :  { %v311_v32 = vpop.f32.mrf.mxu1 }
  0xff   :  { %v350_v33 = vadd.f32 %v311_v32, %v1462_v29 }
 0x100   :  { %v1017_v34 = vpop.f32.mrf.mxu1 }
 0x101   :  { %1121 = vtanh.f32 %v350_v33  ;;  %v353_v35 = vadd.f32 %v1017_v34, %v1462_v29 }
 0x102   :  { %1123 = vtanh.f32 %v351_v31  ;;  %v321_v36 = vpop.f32.mrf.mxu1 }
 0x103   :  { %v352_v37 = vadd.f32 %v321_v36, %v1462_v29 }
 0x104   :  { %v1020_v38 = vpop.f32.mrf.mxu1 }
 0x105   :  { %1125 = vtanh.f32 %v352_v37  ;;  %v355_v39 = vadd.f32 %v1020_v38, %v1462_v29 }
 0x106   :  { %1127 = vtanh.f32 %v353_v35  ;;  %v331_v40 = vpop.f32.mrf.mxu1 }
 0x107   :  { %v354_v41 = vadd.f32 %v331_v40, %v1462_v29 }
 0x108   :  { %v1023_v42 = vpop.f32.mrf.mxu1 }
 0x109   :  { %1129 = vtanh.f32 %v354_v41  ;;  %v357_v43 = vadd.f32 %v1023_v42, %v1462_v29 }
 0x10a   :  { %1131 = vtanh.f32 %v355_v39  ;;  %v341_v44 = vpop.f32.mrf.mxu1 }
 0x10b   :  { %v356_v45 = vadd.f32 %v341_v44, %v1462_v29 }
 0x10d   :  { %1133 = vtanh.f32 %v356_v45 }
 0x10e   :  { %v1122_v46 = vpop.eup %1121  ;;  %1135 = vtanh.f32 %v357_v43 }
 0x10f   :  { %v1124_v47 = vpop.eup %1123  ;;  %1032 = vmatprep.mubr.msk.f32.mxu0 %vm138_vm0, %v1122_v46 }
 0x110   :  { %1033 = vmatmul.mubr.msk.f32.vlgmr.msra.gmra.mxu0 %vm138_vm0, %v1124_v47 }
 0x112   :  { %v1126_v48 = vpop.eup %1125 }
 0x113   :  { %v1128_v49 = vpop.eup %1127  ;;  %1035 = vmatprep.mubr.msk.f32.mxu0 %vm138_vm0, %v1126_v48 }
 0x114   :  { %1036 = vmatmul.mubr.msk.f32.gmra.mxu0 %vm138_vm0, %v1128_v49 }
 0x116   :  { %v1130_v50 = vpop.eup %1129 }
 0x117   :  { %v1132_v51 = vpop.eup %1131  ;;  %1038 = vmatprep.mubr.msk.f32.mxu0 %vm138_vm0, %v1130_v50 }
 0x118   :  { %1039 = vmatmul.mubr.msk.f32.gmra.mxu0 %vm138_vm0, %v1132_v51 }
 0x11a   :  { %v1134_v52 = vpop.eup %1133 }
 0x11b   :  { %v1136_v53 = vpop.eup %1135  ;;  %1041 = vmatprep.mubr.msk.f32.mxu0 %vm138_vm0, %v1134_v52 }
 0x11c   :  { %1042 = vmatmul.mubr.msk.f32.gmra.mxu0 %vm138_vm0, %v1136_v53 }
 0x11d   :  { %1068 = vmatprep.mubr.msk.f32.mxu0 %vm1267_vm2, %v1266_v2 }
 0x1d0   :  { %v1034_v55 = vpop.f32.mrf.mxu0 }
 0x1d1   :  { %v501_v5 = vsel %vm499_vm3, %v1034_v55, -inf }
 0x1d2   :  { %v460_v56 = vpop.f32.mrf.mxu0 }
 0x1d3   :  { %v500_v63 = vsel %vm499_vm3, %v460_v56, -inf }
 0x1d4   :  { %v1037_v57 = vpop.f32.mrf.mxu0 }
 0x1d5   :  { %v503_v6 = vsel %vm499_vm3, %v1037_v57, -inf }
 0x1d6   :  { %v470_v58 = vpop.f32.mrf.mxu0 }
 0x1d7   :  { %v502_v7 = vsel %vm499_vm3, %v470_v58, -inf }
 0x1d8   :  { %v1040_v59 = vpop.f32.mrf.mxu0 }
 0x1d9   :  { %v506_v0 = vsel %vm499_vm3, %v1040_v59, -inf }
 0x1da   :  { %v480_v60 = vpop.f32.mrf.mxu0  ;;  %v507_v9 = vmax.f32 %v501_v5, %v506_v0  ;;  %v640_v0 = vld [vmem:[%s1706_s8 + $0x58] sm:$0xff] }
 0x1db   :  { %v504_v61 = vsel %vm499_vm3, %v480_v60, -inf  ;;  %1045 = vmatpush3.msra.mxu0 %v640_v0  ;;  %v636_v5 = vld [vmem:[%s1706_s8 + $0x38] sm:$0xff] }
 0x1dc   :  { %v1043_v62 = vpop.f32.mrf.mxu0  ;;  %v505_v3 = vmax.f32 %v500_v63, %v504_v61  ;;  %1046 = vmatprep.subr.mxu0 %v1266_v2 }
 0x1dd   :  { %v510_v1 = vsel %vm499_vm3, %v1043_v62, -inf }
 0x1de   :  { %v490_v4 = vpop.f32.mrf.mxu0  ;;  %v511_v11 = vmax.f32 %v503_v6, %v510_v1  ;;  %v512_v14 = vmax.f32 %v505_v3, %v507_v9  ;;  %v639_v1 = vld [vmem:[%s1706_s8 + $0x50] sm:$0xff]  ;;  %v638_v3 = vld [vmem:[%s1706_s8 + $0x48] sm:$0xff]  ;;  %v632_v9 = vld [vmem:[%s1706_s8 + $0x18] sm:$0xff] }
 0x1df   :  { %v508_v8 = vsel %vm499_vm3, %v490_v4, -inf  ;;  %1047 = vmatpush3.msra.mxu0 %v639_v1  ;;  %v635_v6 = vld [vmem:[%s1706_s8 + $0x30] sm:$0xff] }
 0x1e0   :  { %v509_v13 = vmax.f32 %v502_v7, %v508_v8  ;;  %1048 = vmatprep.subr.mxu0 %v1266_v2  ;;  %v634_v7 = vld [vmem:[%s1706_s8 + $0x28] sm:$0xff]  ;;  %v633_v8 = vld [vmem:[%s1706_s8 + $0x20] sm:$0xff] }
 0x1e1   :  { %1049 = vmatpush3.msra.mxu0 %v638_v3 }
 0x1e2   :  { %v513_v22 = vmax.f32 %v509_v13, %v511_v11  ;;  %1050 = vmatprep.subr.mxu0 %v1266_v2  ;;  %v631_v11 = vld [vmem:[%s1706_s8 + $0x10] sm:$0xff]  ;;  %v630_v13 = vld [vmem:[%s1706_s8 + $0x8] sm:$0xff] }
 0x1e4   :  { %v514_v23 = vmax.f32 %v512_v14, %v513_v22 }
 0x1e6   :  { %v517_v24 = vsub.f32 %v470_v58, %v514_v23  ;;  %v515_v25 = vsub.f32 %v460_v56, %v514_v23  ;;  %v516_v26 = vsub.f32 %v1034_v55, %v514_v23  ;;  %v518_v27 = vsub.f32 %v1037_v57, %v514_v23 }
 0x1e7   :  { %v519_v32 = vsub.f32 %v480_v60, %v514_v23  ;;  %v520_v34 = vsub.f32 %v1040_v59, %v514_v23  ;;  %v521_v35 = vsub.f32 %v490_v4, %v514_v23  ;;  %v522_v38 = vsub.f32 %v1043_v62, %v514_v23  ;;  %v637_v4 = vld [vmem:[%s1706_s8 + $0x40] sm:$0xff] }
 0x1e8   :  { %v527_v28 = vmul.f32 1.442695, %v517_v24  ;;  %v523_v30 = vmul.f32 1.442695, %v515_v25  ;;  %v525_v31 = vmul.f32 1.442695, %v516_v26  ;;  %1051 = vmatpush3.msra.mxu0 %v637_v4 }
 0x1e9   :  { %v529_v33 = vmul.f32 1.442695, %v518_v27  ;;  %v531_v36 = vmul.f32 1.442695, %v519_v32  ;;  %v533_v37 = vmul.f32 1.442695, %v520_v34  ;;  %1052 = vmatprep.subr.mxu0 %v1266_v2 }
 0x1ea   :  { %1137 = vpow2.f32 %v527_v28  ;;  %v535_v39 = vmul.f32 1.442695, %v521_v35  ;;  %v537_v40 = vmul.f32 1.442695, %v522_v38  ;;  %1053 = vmatpush3.msra.mxu0 %v636_v5  ;;  %v95_v35 = vld [vmem:[%s94_s0] sm:$0x1] }
 0x1eb   :  { %1139 = vpow2.f32 %v523_v30  ;;  %1054 = vmatprep.subr.mxu0 %v1266_v2  ;;  %96 = vst.msk [vmem:[#allocation2 + $0x2] sm:$0x1] %vm87_vm4, %v95_v35 }
 0x1ec   :  { %1141 = vpow2.f32 %v525_v31  ;;  %1055 = vmatpush3.msra.mxu0 %v635_v6 }
 0x1ed   :  { %1143 = vpow2.f32 %v529_v33  ;;  %1056 = vmatprep.subr.mxu0 %v1266_v2  ;;  %v86_v33 = vld [vmem:[%s85_s27] sm:$0x1] }
 0x1ee   :  { %1145 = vpow2.f32 %v531_v36  ;;  %1057 = vmatpush3.msra.mxu0 %v634_v7  ;;  %88 = vst.msk [vmem:[#allocation2] sm:$0x1] %vm87_vm4, %v86_v33  ;;  %v757_v33 = vld [vmem:[%s1708_s10] sm:$0xff] }
 0x1ef   :  { %1147 = vpow2.f32 %v533_v37  ;;  %1058 = vmatprep.subr.mxu0 %v1266_v2  ;;  %v99_v37 = vld [vmem:[%s98_s19] sm:$0x1] }
 0x1f0   :  { %1149 = vpow2.f32 %v535_v39  ;;  %1059 = vmatpush3.msra.mxu0 %v633_v8  ;;  %100 = vst.msk [vmem:[#allocation2 + $0x3] sm:$0x1] %vm87_vm4, %v99_v37  ;;  %v103_v39 = vld [vmem:[%s102_s22] sm:$0x1] }
 0x1f1   :  { %1151 = vpow2.f32 %v537_v40  ;;  %1060 = vmatprep.subr.mxu0 %v1266_v2  ;;  %104 = vst.msk [vmem:[#allocation2 + $0x4] sm:$0x1] %vm87_vm4, %v103_v39 }
 0x1f2   :  { %1061 = vmatpush3.msra.mxu0 %v632_v9 }
 0x1f3   :  { %1062 = vmatprep.subr.mxu0 %v1266_v2 }
 0x1f4   :  { %1063 = vmatpush3.msra.mxu0 %v631_v11  ;;  %v772_v11 = vld [vmem:[%s1708_s10 + $0x78] sm:$0xff] }
 0x1f5   :  { %1064 = vmatprep.subr.mxu0 %v1266_v2  ;;  %1072 = vmatpush3.msra.mxu1 %v772_v11 }
 0x1f6   :  { %1065 = vmatpush3.msra.mxu0 %v630_v13  ;;  %v771_v13 = vld [vmem:[%s1708_s10 + $0x70] sm:$0xff]  ;;  %1073 = vmatprep.subr.mxu1 %v1266_v2 }
 0x1f7   :  { %v1138_v41 = vpop.eup %1137  ;;  %1066 = vmatprep.subr.mxu0 %v1266_v2  ;;  %1074 = vmatpush3.msra.mxu1 %v771_v13 }
 0x1f8   :  { %v1140_v42 = vpop.eup %1139  ;;  %566 = vperm.xlu1 %1120, %v1138_v41   ;;  %v542_v48 = vsel %vm499_vm3, %v1138_v41, 0.0  ;;  %1075 = vmatprep.subr.mxu1 %v1266_v2 }
 0x1f9   :  { %v1142_v43 = vpop.eup %1141  ;;  %556 = vperm.xlu0 %1119, %v1140_v42   ;;  %v539_v44 = vsel %vm499_vm3, %v1140_v42, 0.0  ;;  %v107_v42 = vld [vmem:[%s106_s1] sm:$0x1] }
 0x1fa   :  { %v540_v45 = vsel %vm499_vm3, %v1142_v43, 0.0  ;;  %v1144_v46 = vpop.eup %1143  ;;  %108 = vst.msk [vmem:[#allocation2 + $0x5] sm:$0x1] %vm87_vm4, %v107_v42 }
 0x1fb   :  { %v541_v47 = vadd.f32 %v540_v45, %v539_v44  ;;  %v1146_v49 = vpop.eup %1145  ;;  %v544_v51 = vsel %vm499_vm3, %v1144_v46, 0.0 }
 0x1fc   :  { %v1148_v52 = vpop.eup %1147  ;;  %v546_v54 = vsel %vm499_vm3, %v1146_v49, 0.0 }
 0x1fd   :  { %561 = vperm.xlu0 %1119, %v1142_v43   ;;  %v543_v50 = vadd.f32 %v542_v48, %v541_v47  ;;  %v1150_v55 = vpop.eup %1149  ;;  %v548_v57 = vsel %vm499_vm3, %v1148_v52, 0.0  ;;  %v629_v43 = vld [vmem:[%s1706_s8] sm:$0xff] }
 0x1fe   :  { %v1152_v58 = vpop.eup %1151  ;;  %v550_v60 = vsel %vm499_vm3, %v1150_v55, 0.0  ;;  %1067 = vmatpush3.msra.mxu0 %v629_v43 }
 0x1ff   :  { %v545_v53 = vadd.f32 %v544_v51, %v543_v50  ;;  %v552_v62 = vsel %vm499_vm3, %v1152_v58, 0.0 }
 0x201   :  { %571 = vperm.xlu0 %1119, %v1144_v46   ;;  %v547_v56 = vadd.f32 %v546_v54, %v545_v53  ;;  %v111_v46 = vld [vmem:[%s110_s5] sm:$0x1] }
 0x202   :  { %112 = vst.msk [vmem:[#allocation2 + $0x6] sm:$0x1] %vm87_vm4, %v111_v46 }
 0x203   :  { %v549_v59 = vadd.f32 %v548_v57, %v547_v56 }
 0x205   :  { %581 = vperm.xlu0 %1119, %v1148_v52   ;;  %v551_v61 = vadd.f32 %v550_v60, %v549_v59 }
 0x207   :  { %v553_v63 = vadd.f32 %v552_v62, %v551_v61 }
 0x209   :  { %619 = vperm.xlu1 %1120, %v553_v63   ;;  %591 = vperm.xlu0 %1119, %v1152_v58  }
 0x20d   :  { %576 = vperm.xlu1 %1120, %v1146_v49   ;;  %723 = vrot.lane.b32.xlu0 %v1462_v29, %s1269_s6 }
 0x211   :  { %586 = vperm.xlu1 %1120, %v1150_v55  }
 0x273   :  { %v567_v25 = vpop.permute.xlu1 %566 }
 0x274   :  { %v557_v14 = vpop.permute.xlu0 %556  ;;  %v596_v28 = vmul.f32 %v567_v25, %v1402_v16  ;;  %v766_v25 = vld [vmem:[%s1708_s10 + $0x48] sm:$0xff] }
 0x275   :  { %v594_v24 = vmul.f32 %v557_v14, %v1380_v12  ;;  %v770_v14 = vld [vmem:[%s1708_s10 + $0x68] sm:$0xff] }
 0x276   :  { %v605_v16 = vsel %vm220_vm1, %v596_v28, 0.0  ;;  %1076 = vmatpush3.msra.mxu1 %v770_v14  ;;  %v763_v28 = vld [vmem:[%s1708_s10 + $0x30] sm:$0xff] }
 0x277   :  { %v602_v30 = vsel %vm220_vm1, %v594_v24, 0.0  ;;  %1077 = vmatprep.subr.mxu1 %v1266_v2  ;;  %v767_v24 = vld [vmem:[%s1708_s10 + $0x50] sm:$0xff] }
 0x278   :  { %v562_v22 = vpop.permute.xlu0 %561 }
 0x279   :  { %v595_v23 = vmul.f32 %v562_v22, %v1397_v15  ;;  %v768_v22 = vld [vmem:[%s1708_s10 + $0x58] sm:$0xff] }
 0x27b   :  { %v603_v27 = vsel %vm220_vm1, %v595_v23, 0.0 }
 0x27c   :  { %v572_v26 = vpop.permute.xlu0 %571  ;;  %v604_v31 = vadd.f32 %v603_v27, %v602_v30  ;;  %v764_v27 = vld [vmem:[%s1708_s10 + $0x38] sm:$0xff]  ;;  %v762_v30 = vld [vmem:[%s1708_s10 + $0x28] sm:$0xff] }
 0x27d   :  { %v597_v15 = vmul.f32 %v572_v26, %v1412_v17  ;;  %v91_v17 = vld [vmem:[%s90_s14] sm:$0x1]  ;;  %s1271_s14 = smov 64  }
 0x27e   :  { %v606_v34 = vadd.f32 %v605_v16, %v604_v31  ;;  %92 = vst.msk [vmem:[#allocation2 + $0x1] sm:$0x1] %vm87_vm4, %v91_v17  ;;  %v765_v26 = vld [vmem:[%s1708_s10 + $0x40] sm:$0xff] }
 0x27f   :  { %v607_v36 = vsel %vm220_vm1, %v597_v15, 0.0  ;;  %v761_v31 = vld [vmem:[%s1708_s10 + $0x20] sm:$0xff]  ;;  %v760_v15 = vld [vmem:[%s1708_s10 + $0x18] sm:$0xff] }
 0x280   :  { %v582_v12 = vpop.permute.xlu0 %581  ;;  %v608_v44 = vadd.f32 %v607_v36, %v606_v34 }
 0x281   :  { %v599_v40 = vmul.f32 %v582_v12, %v1426_v19  ;;  %v115_v19 = vld [vmem:[%s114_s30] sm:$0x1]  ;;  %v759_v12 = vld [vmem:[%s1708_s10 + $0x10] sm:$0xff] }
 0x282   :  { %116 = vst.msk [vmem:[#allocation2 + $0x7] sm:$0x1] %vm87_vm4, %v115_v19 }
 0x283   :  { %v611_v49 = vsel %vm220_vm1, %v599_v40, 0.0 }
 0x284   :  { %v620_v32 = vpop.permute.xlu1 %619  ;;  %v592_v45 = vpop.permute.xlu0 %591 }
 0x285   :  { %1153 = vrcp.f32 %v620_v32  ;;  %v601_v50 = vmul.f32 %v592_v45, %v1440_v21  ;;  %v758_v32 = vld [vmem:[%s1708_s10 + $0x8] sm:$0xff] }
 0x287   :  { %v615_v55 = vsel %vm220_vm1, %v601_v50, 0.0 }
 0x288   :  { %v577_v38 = vpop.permute.xlu1 %576  ;;  %v724_v63 = vpop.permute.xlu0 %723 }
 0x289   :  { %v598_v41 = vmul.f32 %v577_v38, %v1417_v18  ;;  %v117_v59 = vld [vmem:[#allocation2] sm:$0xff] }
 0x28b   :  { %v609_v18 = vsel %vm220_vm1, %v598_v41, 0.0 }
 0x28c   :  { %v610_v47 = vadd.f32 %v609_v18, %v608_v44  ;;  %v587_v48 = vpop.permute.xlu1 %586 }
 0x28d   :  { %v600_v51 = vmul.f32 %v587_v48, %v1431_v20  ;;  %v919_v20 = vld [vmem:[%s1707_s9] ss:$0 sm:$0xff] }
 0x28e   :  { %v612_v52 = vadd.f32 %v611_v49, %v610_v47 }
 0x28f   :  { %v613_v53 = vsel %vm220_vm1, %v600_v51, 0.0 }
 0x290   :  { %v614_v54 = vadd.f32 %v613_v53, %v612_v52 }
 0x292   :  { %v1154_v56 = vpop.eup %1153  ;;  %v616_v57 = vadd.f32 %v615_v55, %v614_v54 }
 0x294   :  { %v623_v58 = vmul.f32 %v1154_v56, %v616_v57 }
 0x296   :  { %625 = vrot.lane.b32.xlu1 %v623_v58, %s1270_s3 }
 0x29a   :  { %731 = vrot.lane.b32.xlu1 %v1462_v29, %s1270_s3 }
 0x308   :  { %v626_v60 = vpop.permute.xlu1 %625 }
 0x309   :  { %v1606_v21 = vsel %vm138_vm0, %v117_v59, %v626_v60 }
 0x30a   :  { %1069 = vmatmul.mubr.msk.f32.vlgmr.msra.gmra.mxu0 %vm648_vm5, %v1606_v21 }
 0x30c   :  { %v732_v6 = vpop.permute.xlu1 %731 }
 0x3ca   :  { %v718_v61 = vpop.f32.mrf.mxu0 }
 0x3cb   :  { %v719_v62 = vadd.f32 %v919_v20, %v718_v61 }
 0x3cc   :  { %v1070_v0 = vpop.f32.mrf.mxu0 }
 0x3cd   :  { %v726_v1 = vadd.f32 %v724_v63, %v719_v62 }
 0x3cf   :  { %v727_v3 = vmul.f32 0.5, %v726_v1 }
 0x3d1   :  { %1155 = vtanh.f32 %v727_v3 }
 0x3de   :  { %v1156_v29 = vpop.eup %1155 }
 0x3df   :  { %v729_v4 = vadd.f32 1.0, %v1156_v29 }
 0x3e1   :  { %v1613_v5 = vmul.f32 0.5, %v729_v4 }
 0x3e3   :  { %v734_v7 = vmul.f32 %v732_v6, %v1613_v5  ;;  %v741_v17 = vsub.f32 1.0, %v1613_v5 }
 0x3e5   :  { %736 = vrot.lane.b32.xlu0 %v734_v7, %s1271_s14 }
 0x3e9   :  { %747 = vrot.lane.b32.xlu0 %v1372_v10, %s1270_s3  ;;  %v769_v10 = vld [vmem:[%s1708_s10 + $0x60] sm:$0xff]  ;;  %s1272_s10 = smov [#allocation11]  }
 0x3ea   :  { %1078 = vmatpush3.msra.mxu1 %v769_v10  ;;  %s871_s19 = sshll.u32 %s1272_s10, 4  ;;  %s872_s19 = int_to_ptr.vmem [resolvable:$true] %s871_s19 }
 0x3eb   :  { %1079 = vmatprep.subr.mxu1 %v1266_v2  ;;  %s1211_s20 = scalar_lea.vmem %s872_s19, 128  ;;  %p1216_p2 = scmp.lt.s32.totalorder %s872_s19, %s872_s19 }
 0x3ec   :  { %1080 = vmatpush3.msra.mxu1 %v768_v22  ;;  %p1212_p1 = scmp.ne.s32.totalorder %s872_s19, %s1211_s20  ;;  %p1217_p3 = scmp.lt.s32.totalorder %s1211_s20, %s1211_s20 }
 0x3ed   :  { %1081 = vmatprep.subr.mxu1 %v1266_v2 }
 0x3ee   :  { %1082 = vmatpush3.msra.mxu1 %v767_v24  ;;  %p1218_p4 = por %p1217_p3, %p1216_p2 }
 0x3ef   :  { %1083 = vmatprep.subr.mxu1 %v1266_v2 }
 0x3f0   :  { %1084 = vmatpush3.msra.mxu1 %v766_v25  ;;  %p1219_p5 = pnand %p1218_p4, %p1212_p1 }
 0x3f1   :  { %1085 = vmatprep.subr.mxu1 %v1266_v2 }
 0x3f2   :  { %1086 = vmatpush3.msra.mxu1 %v765_v26 }
 0x3f3   :  { %1087 = vmatprep.subr.mxu1 %v1266_v2 }
 0x3f4   :  { %1088 = vmatpush3.msra.mxu1 %v764_v27 }
 0x3f5   :  { %1089 = vmatprep.subr.mxu1 %v1266_v2 }
 0x3f6   :  { %1090 = vmatpush3.msra.mxu1 %v763_v28 }
 0x3f7   :  { %1091 = vmatprep.subr.mxu1 %v1266_v2 }
 0x3f8   :  { %1092 = vmatpush3.msra.mxu1 %v762_v30 }
 0x3f9   :  { %1093 = vmatprep.subr.mxu1 %v1266_v2 }
 0x3fa   :  { %1094 = vmatpush3.msra.mxu1 %v761_v31 }
 0x3fb   :  { %1095 = vmatprep.subr.mxu1 %v1266_v2 }
 0x3fc   :  { %1096 = vmatpush3.msra.mxu1 %v760_v15 }
 0x3fd   :  { %1097 = vmatprep.subr.mxu1 %v1266_v2 }
 0x3fe   :  { %1098 = vmatpush3.msra.mxu1 %v759_v12 }
 0x3ff   :  { %1099 = vmatprep.subr.mxu1 %v1266_v2 }
 0x400   :  { %1100 = vmatpush3.msra.mxu1 %v758_v32 }
 0x401   :  { %1101 = vmatprep.subr.mxu1 %v1266_v2 }
 0x402   :  { %1102 = vmatpush3.msra.mxu1 %v757_v33 }
 0x457   :  { %v737_v8 = vpop.permute.xlu0 %736 }
 0x458   :  { %v739_v9 = vadd.f32 %v737_v8, %v719_v62 }
 0x45a   :  { %1157 = vtanh.f32 %v739_v9 }
 0x45b   :  { %v748_v16 = vpop.permute.xlu0 %747 }
 0x45c   :  { %v750_v35 = vmul.f32 %v748_v16, %v1613_v5 }
 0x467   :  { %v1158_v23 = vpop.eup %1157 }
 0x468   :  { %743 = vrot.lane.b32.xlu1 %v1158_v23, %s1269_s6 }
 0x4da   :  { %v744_v34 = vpop.permute.xlu1 %743 }
 0x4db   :  { %v746_v36 = vmul.f32 %v744_v34, %v741_v17 }
 0x4dd   :  { %v751_v37 = vadd.f32 %v750_v35, %v746_v36 }
 0x4df   :  { %851 = vrot.lane.b32.xlu0 %v751_v37, %s1269_s6  ;;  %753 = vrot.lane.b32.xlu1 %v751_v37, %s1271_s14 }
 0x551   :  { %v852_v38 = vpop.permute.xlu0 %851  ;;  %v754_v39 = vpop.permute.xlu1 %753 }
 0x552   :  { %854 = vst.msk [vmem:[#allocation11] sm:$0xff] %vm138_vm0, %v852_v38  ;;  %v756_v2 = vsel %vm648_vm5, %v1606_v21, %v754_v39 }
 0x553   :  { %1104 = vmatmul.mubr.f32.vlgmr.msra.gmra.mxu1 %v756_v2 }
 0x554   :  { %1222 = shalt.err (!%p1219_p5)
}
 0x555   :  { %874 = dma.vmem_to_hbm [thread:$0]  %s872_s19, 128, %s1711_s13, [#allocation12]   ;;  %v921_v40 = vld [vmem:[%s1709_s11] ss:$0 sm:$0xff] }
 0x556   :  { %s1273_s23 = smov [#allocation10]  }
 0x557   :  { %s861_s7 = sshll.u32 %s1273_s23, 4  ;;  %s862_s7 = int_to_ptr.vmem [resolvable:$true] %s861_s7 }
 0x558   :  { %s1231_s1 = scalar_lea.vmem %s862_s7, 128  ;;  %p1236_p7 = scmp.lt.s32.totalorder %s862_s7, %s862_s7 }
 0x559   :  { %p1232_p6 = scmp.ne.s32.totalorder %s862_s7, %s1231_s1  ;;  %p1237_p8 = scmp.lt.s32.totalorder %s1231_s1, %s1231_s1 }
 0x55b   :  { %p1238_p9 = por %p1237_p8, %p1236_p7 }
 0x55d   :  { %p1239_p10 = pnand %p1238_p9, %p1232_p6 }
 0x613   :  { %v846_v41 = vpop.f32.mrf.mxu1 }
 0x614   :  { %v847_v42 = vadd.f32 %v921_v40, %v846_v41 }
 0x615   :  { %v1105_v43 = vpop.f32.mrf.mxu1 }
 0x616   :  { %850 = vst [vmem:[#allocation10] sm:$0xff] %v847_v42 }
 0x617   :  { %1242 = shalt.err (!%p1239_p10)
}
 0x618   :  { %864 = dma.vmem_to_hbm [thread:$0]  %s862_s7, 128, %s1710_s12, [#allocation5]  }
 0x619   :  { %1257 = dma.done.wait [#allocation5], 128  }
 0x61a   :  { %1258 = vsyncadd [#allocation5], 4294967168 }
 0x61b   :  { %1259 = dma.done.wait [#allocation12], 128  }
 0x61c   :  { %1260 = vsyncadd [#allocation12], 4294967168 }
 0x61d   :  { %881 = vsyncpa [#allocation4], 1 }
 0x61e   :  { %882 = vsyncpa [#allocation9], 1 }
 0x61f   :  { %883 = vsyncpa [#allocation5], 1 }
 0x620   :  { %884 = vsyncpa [#allocation12], 1 }
 0x621   :  { %885 = vsyncpa [#allocation6], 1 }

</bundles_post_ra>
